<compile_context>
chip_gen: v5e
topology: v5e:2x2
jax: 0.10.0
libtpu: 0.0.40
codegen_flags: <defaults>
</compile_context>

<pallas_src>
import functools

import jax
import jax.numpy as jnp
from jax.experimental import pallas as pl
from jax.experimental.pallas import tpu as pltpu


def _round_up(x, m):
    return ((x + m - 1) // m) * m


def _cdk_kernel(xh_ref, xm_ref, w_ref, shift_ref, o_ref, *, shifts, halo_w, tile_m):
    # Halo'd input slab for this row tile: flattened padded-input columns
    # [i*tile_m - halo_w, (i+1)*tile_m).
    slab = jnp.concatenate([xh_ref[...], xm_ref[...]], axis=1)  # (Cin_p, halo_w+tile_m) bf16
    cin_p = slab.shape[0]
    acc = None
    for d, s in enumerate(shifts):
        # Phase d = (dh, dw): its input tap is the slab shifted left by s columns.
        piece = jax.lax.slice(slab, (0, halo_w - s), (cin_p, halo_w - s + tile_m))
        part = jnp.dot(w_ref[d], piece, preferred_element_type=jnp.float32)
        acc = part if acc is None else acc + part
    # Fused BatchNorm shift (scale already folded into the weights) + ReLU, f32.
    y = jnp.maximum(acc + shift_ref[...], 0.0)
    o_ref[...] = y.astype(o_ref.dtype)


def cdk_block_forward(x, weight, gamma, beta, run_mean, run_var, *, eps=1e-5, tile_m=512):
    """CDkBLOCK forward: ConvTranspose2d(k=4, s=2, p=0, no bias) + BN(eval) + ReLU.

    x:      (N, Cin, H, W)     NCHW, f32
    weight: (Cin, Cout, 4, 4)  torch ConvTranspose2d layout
    Returns bf16 (N, Cout, 2*(H+1), 2*(W+1)).
    tile_m can be raised to 1024-2048 on v5e/v6e for large inputs.
    """
    N, Cin, H, W = x.shape
    Cin_w, Cout, kH, kW = weight.shape
    assert Cin_w == Cin and kH == 4 and kW == 4, "specialized to k=4, s=2, p=0"

    Hp, Wp = H + 2, W + 2            # 1-padded grid (shared input/output column space)
    Hh, Ww = H + 1, W + 1            # per-phase valid output grid
    H_out, W_out = 2 * Hh, 2 * Ww

    Ctot = 4 * Cout                  # output rows, ordered (rh, rw, co)
    C_pad = _round_up(Ctot, 16)      # bf16 sublane packing
    Cin_p = _round_up(Cin, 8)

    C_cols = N * Hp * Wp             # flattened (n, h', w') columns
    halo_w = _round_up(Wp + 1, 128)  # max lookback shift = dh*Wp + dw <= Wp + 1

    # Lane-dense tile; keep the grid >= 2 steps so both v7x TensorCores get work.
    tile_m = max(128, _round_up(tile_m, 128))
    if C_cols > 128:
        tile_m = min(tile_m, max(128, _round_up(pl.cdiv(C_cols, 2), 128)))
    tile_m = max(tile_m, halo_w)     # halo gather below requires halo_w <= tile_m
    G = pl.cdiv(C_cols, tile_m)
    cols_pad = G * tile_m

    # ---- glue: flattened 1-padded bf16 input, (Cin_p, G*tile_m) ---------------
    xp = jnp.pad(x.astype(jnp.bfloat16), ((0, 0), (0, 0), (1, 1), (1, 1)))
    xf = xp.transpose(1, 0, 2, 3).reshape(Cin, C_cols)
    xmain = jnp.pad(xf, ((0, Cin_p - Cin), (0, cols_pad - C_cols)))
    # Per-tile left halo: the halo_w columns preceding each tile (zeros for tile 0).
    xhalo = jnp.pad(xmain, ((0, 0), (halo_w, 0)))[:, :cols_pad]
    xhalo = xhalo.reshape(Cin_p, G, tile_m)[:, :, :halo_w].reshape(Cin_p, G * halo_w)

    # ---- glue: conv-T weights -> 4 phase matrices with BN scale folded (f32) --
    inv_std = jax.lax.rsqrt(run_var.astype(jnp.float32) + eps)
    sc = gamma.astype(jnp.float32) * inv_std                        # (Cout,)
    sh = beta.astype(jnp.float32) - run_mean.astype(jnp.float32) * sc
    # y[2a+rh, 2b+rw] = sum_{ci,dh,dw} xpad[ci, a+1-dh, b+1-dw] * W[ci, co, 2dh+rh, 2dw+rw]
    w6 = weight.astype(jnp.float32).reshape(Cin, Cout, 2, 2, 2, 2)  # (ci,co,dh,rh,dw,rw)
    wp = w6.transpose(2, 4, 3, 5, 1, 0).reshape(4, Ctot, Cin)       # (d=(dh,dw),(rh,rw,co),ci)
    wp = wp * jnp.tile(sc, 4)[None, :, None]                        # fold BN scale in f32
    wp = jnp.pad(wp.astype(jnp.bfloat16), ((0, 0), (0, C_pad - Ctot), (0, Cin_p - Cin)))
    shift = jnp.pad(jnp.tile(sh, 4).reshape(Ctot, 1), ((0, C_pad - Ctot), (0, 0)))

    shifts = tuple(dh * Wp + dw for dh in (0, 1) for dw in (0, 1))  # d = 2*dh + dw

    # ---- VMEM budget / cost hint ----------------------------------------------
    per_step = (2 * (Cin_p * (tile_m + halo_w) + C_pad * tile_m) * 2
                + 2 * (4 * C_pad * Cin_p * 2 + C_pad * 4))
    vmem_limit = int(min(48 * 2**20, max(8 * 2**20, 4 * per_step)))
    cost = pl.CostEstimate(
        flops=2 * C_pad * 4 * Cin_p * cols_pad,
        transcendentals=0,
        bytes_accessed=((xmain.size + xhalo.size + wp.size) * 2 + shift.size * 4
                        + C_pad * cols_pad * 2))

    kernel = functools.partial(_cdk_kernel, shifts=shifts, halo_w=halo_w, tile_m=tile_m)

    out = pl.pallas_call(
        kernel,
        out_shape=jax.ShapeDtypeStruct((C_pad, cols_pad), jnp.bfloat16),
        grid_spec=pltpu.PrefetchScalarGridSpec(
            num_scalar_prefetch=0,
            grid=(G,),
            in_specs=[
                pl.BlockSpec((Cin_p, halo_w), lambda i: (0, i)),       # left halo tile
                pl.BlockSpec((Cin_p, tile_m), lambda i: (0, i)),       # main input tile
                pl.BlockSpec((4, C_pad, Cin_p), lambda i: (0, 0, 0)),  # phase weights (resident)
                pl.BlockSpec((C_pad, 1), lambda i: (0, 0)),            # BN shift (resident)
            ],
            out_specs=pl.BlockSpec((C_pad, tile_m), lambda i: (0, i)),
        ),
        compiler_params=pltpu.CompilerParams(
            dimension_semantics=("parallel",),
            vmem_limit_bytes=vmem_limit),
        cost_estimate=cost,
    )(xhalo, xmain, wp, shift)

    # ---- glue: drop padded-grid border, interleave the 4 phases into NCHW (bf16)
    y = out[:Ctot, :C_cols].reshape(2, 2, Cout, N, Hp, Wp)[:, :, :, :, 1:, 1:]
    y = y.transpose(3, 2, 4, 0, 5, 1).reshape(N, Cout, H_out, W_out)
    # TODO(synk): Dropout2d(p=0.5) training-mode stochastic channel masking is not
    # implemented; eval-mode (identity) semantics are used here.
    return y


def _reference(x, weight, gamma, beta, rm, rv, *, k=4, s=2, p=0, eps=1e-5):
    """Pure-JAX f32 reference: conv_transpose via lhs-dilated conv + BN(eval) + ReLU."""
    w_oihw = jnp.flip(weight, axis=(2, 3)).transpose(1, 0, 2, 3)  # (Cout,Cin,k,k)
    y = jax.lax.conv_general_dilated(
        x, w_oihw, window_strides=(1, 1),
        padding=[(k - 1 - p, k - 1 - p)] * 2,
        lhs_dilation=(s, s),
        dimension_numbers=('NCHW', 'OIHW', 'NCHW'))
    scale = gamma / jnp.sqrt(rv + eps)
    y = y * scale[None, :, None, None] + (beta - rm * scale)[None, :, None, None]
    return jnp.maximum(y, 0.0)


if __name__ == "__main__":
    key = jax.random.PRNGKey(0)
    k_x, k_w, k_g, k_b, k_m, k_v = jax.random.split(key, 6)

    N, Cin, Cout, H, W = 2, 4, 8, 16, 16
    ksize = 4

    x = jax.random.normal(k_x, (N, Cin, H, W), dtype=jnp.float32)
    # ConvTranspose2d weight layout: (in_channels, out_channels, kH, kW), no bias
    weight = jax.random.normal(k_w, (Cin, Cout, ksize, ksize), dtype=jnp.float32) * 0.1
    gamma = jax.random.uniform(k_g, (Cout,), minval=0.5, maxval=1.5, dtype=jnp.float32)
    beta = jax.random.normal(k_b, (Cout,), dtype=jnp.float32) * 0.1
    run_mean = jax.random.normal(k_m, (Cout,), dtype=jnp.float32) * 0.1
    run_var = jax.random.uniform(k_v, (Cout,), minval=0.5, maxval=1.5, dtype=jnp.float32)

    y = cdk_block_forward(x, weight, gamma, beta, run_mean, run_var)
    y = jax.block_until_ready(y)

    y_ref = _reference(x, weight, gamma, beta, run_mean, run_var, k=ksize, s=2, p=0)
    assert y.shape == (N, Cout, (H - 1) * 2 + ksize, (W - 1) * 2 + ksize)
    # bf16 operands + bf16 output (f32 MXU accumulation) -> loosened tolerance vs f32 ref
    assert jnp.allclose(y.astype(jnp.float32), y_ref, atol=3e-2, rtol=3e-2)

    print("KERNEL_OK")
</pallas_src>

<mosaic_0001>
module attributes {stable_mosaic.version = 11 : i64} {
  func.func @_cdk_kernel(%arg0: i32, %arg1: memref<8x128xbf16, #tpu.memory_space<vmem>>, %arg2: memref<8x384xbf16, #tpu.memory_space<vmem>>, %arg3: memref<4x32x8xbf16, #tpu.memory_space<vmem>>, %arg4: memref<32x1xf32, #tpu.memory_space<vmem>>, %arg5: memref<32x384xbf16, #tpu.memory_space<vmem>>) attributes {dimension_semantics = [#tpu.dimension_semantics<parallel>], iteration_bounds = array<i64: 2>, scalar_prefetch = 0 : i64, scratch_operands = 0 : i64, tpu.core_type = #tpu.core_type<tc>, window_params = [{transform_indices = @transform_0, window_bounds = array<i64: 8, 128>}, {transform_indices = @transform_1, window_bounds = array<i64: 8, 384>}, {pipeline_mode = #tpu.pipeline_mode<synchronous>, transform_indices = @transform_2, window_bounds = array<i64: 4, 32, 8>}, {pipeline_mode = #tpu.pipeline_mode<synchronous>, transform_indices = @transform_3, window_bounds = array<i64: 32, 1>}, {transform_indices = @transform_4, window_bounds = array<i64: 32, 384>}]} {
    %c0 = arith.constant 0 : index
    %c0_0 = arith.constant 0 : index
    %0 = vector.load %arg1[%c0, %c0_0] : memref<8x128xbf16, #tpu.memory_space<vmem>>, vector<8x128xbf16>
    %c0_1 = arith.constant 0 : index
    %c0_2 = arith.constant 0 : index
    %1 = vector.load %arg2[%c0_1, %c0_2] : memref<8x384xbf16, #tpu.memory_space<vmem>>, vector<8x384xbf16>
    %2 = tpu.concatenate %0, %1 in 1 : vector<8x128xbf16>, vector<8x384xbf16> -> vector<8x512xbf16>
    %3 = vector.extract_strided_slice %2 {offsets = [0, 128], sizes = [8, 384], strides = [1, 1]} : vector<8x512xbf16> to vector<8x384xbf16>
    %c0_3 = arith.constant 0 : index
    %c0_4 = arith.constant 0 : index
    %c0_5 = arith.constant 0 : index
    %4 = vector.load %arg3[%c0_3, %c0_4, %c0_5] : memref<4x32x8xbf16, #tpu.memory_space<vmem>>, vector<1x32x8xbf16>
    %5 = vector.shape_cast %4 : vector<1x32x8xbf16> to vector<32x8xbf16>
    %cst = arith.constant dense<0.000000e+00> : vector<32x384xf32>
    %6 = tpu.matmul %5, %3, %cst {dimension_numbers = #tpu.dot_dimension_numbers<[1], [0], [0], [1], [0, 0, 1, 1], [], []>} : vector<32x8xbf16>, vector<8x384xbf16>, vector<32x384xf32> -> vector<32x384xf32>
    %7 = vector.extract_strided_slice %2 {offsets = [0, 127], sizes = [8, 384], strides = [1, 1]} : vector<8x512xbf16> to vector<8x384xbf16>
    %c1 = arith.constant 1 : index
    %c0_6 = arith.constant 0 : index
    %c0_7 = arith.constant 0 : index
    %8 = vector.load %arg3[%c1, %c0_6, %c0_7] : memref<4x32x8xbf16, #tpu.memory_space<vmem>>, vector<1x32x8xbf16>
    %9 = vector.shape_cast %8 : vector<1x32x8xbf16> to vector<32x8xbf16>
    %cst_8 = arith.constant dense<0.000000e+00> : vector<32x384xf32>
    %10 = tpu.matmul %9, %7, %cst_8 {dimension_numbers = #tpu.dot_dimension_numbers<[1], [0], [0], [1], [0, 0, 1, 1], [], []>} : vector<32x8xbf16>, vector<8x384xbf16>, vector<32x384xf32> -> vector<32x384xf32>
    %11 = arith.addf %6, %10 : vector<32x384xf32>
    %12 = vector.extract_strided_slice %2 {offsets = [0, 110], sizes = [8, 384], strides = [1, 1]} : vector<8x512xbf16> to vector<8x384xbf16>
    %c2 = arith.constant 2 : index
    %c0_9 = arith.constant 0 : index
    %c0_10 = arith.constant 0 : index
    %13 = vector.load %arg3[%c2, %c0_9, %c0_10] : memref<4x32x8xbf16, #tpu.memory_space<vmem>>, vector<1x32x8xbf16>
    %14 = vector.shape_cast %13 : vector<1x32x8xbf16> to vector<32x8xbf16>
    %cst_11 = arith.constant dense<0.000000e+00> : vector<32x384xf32>
    %15 = tpu.matmul %14, %12, %cst_11 {dimension_numbers = #tpu.dot_dimension_numbers<[1], [0], [0], [1], [0, 0, 1, 1], [], []>} : vector<32x8xbf16>, vector<8x384xbf16>, vector<32x384xf32> -> vector<32x384xf32>
    %16 = arith.addf %11, %15 : vector<32x384xf32>
    %17 = vector.extract_strided_slice %2 {offsets = [0, 109], sizes = [8, 384], strides = [1, 1]} : vector<8x512xbf16> to vector<8x384xbf16>
    %c3 = arith.constant 3 : index
    %c0_12 = arith.constant 0 : index
    %c0_13 = arith.constant 0 : index
    %18 = vector.load %arg3[%c3, %c0_12, %c0_13] : memref<4x32x8xbf16, #tpu.memory_space<vmem>>, vector<1x32x8xbf16>
    %19 = vector.shape_cast %18 : vector<1x32x8xbf16> to vector<32x8xbf16>
    %cst_14 = arith.constant dense<0.000000e+00> : vector<32x384xf32>
    %20 = tpu.matmul %19, %17, %cst_14 {dimension_numbers = #tpu.dot_dimension_numbers<[1], [0], [0], [1], [0, 0, 1, 1], [], []>} : vector<32x8xbf16>, vector<8x384xbf16>, vector<32x384xf32> -> vector<32x384xf32>
    %21 = arith.addf %16, %20 : vector<32x384xf32>
    %c0_15 = arith.constant 0 : index
    %c0_16 = arith.constant 0 : index
    %22 = vector.load %arg4[%c0_15, %c0_16] : memref<32x1xf32, #tpu.memory_space<vmem>>, vector<32x1xf32>
    %23 = vector.broadcast %22 : vector<32x1xf32> to vector<32x384xf32>
    %24 = arith.addf %21, %23 : vector<32x384xf32>
    %cst_17 = arith.constant 0.000000e+00 : f32
    %25 = vector.broadcast %cst_17 : f32 to vector<32x384xf32>
    %26 = arith.maximumf %24, %25 : vector<32x384xf32>
    %27 = arith.truncf %26 : vector<32x384xf32> to vector<32x384xbf16>
    %c0_18 = arith.constant 0 : index
    %c0_19 = arith.constant 0 : index
    %28 = vector.load %arg5[%c0_18, %c0_19] : memref<32x384xbf16, #tpu.memory_space<vmem>>, vector<32x384xbf16>
    tpu.vector_store %arg5[%c0_18, %c0_19], %27 {strides = array<i32>} : memref<32x384xbf16, #tpu.memory_space<vmem>>, vector<32x384xbf16>,
    return
  }
  func.func @transform_0(%arg0: i32) -> (i32, i32) {
    %c0_i32 = arith.constant 0 : i32
    %c0_i32_0 = arith.constant 0 : i32
    return %c0_i32, %arg0 : i32, i32
  }
  func.func @transform_1(%arg0: i32) -> (i32, i32) {
    %c0_i32 = arith.constant 0 : i32
    %c0_i32_0 = arith.constant 0 : i32
    return %c0_i32, %arg0 : i32, i32
  }
  func.func @transform_2(%arg0: i32) -> (i32, i32, i32) {
    %c0_i32 = arith.constant 0 : i32
    %c0_i32_0 = arith.constant 0 : i32
    %c0_i32_1 = arith.constant 0 : i32
    %c0_i32_2 = arith.constant 0 : i32
    return %c0_i32, %c0_i32_0, %c0_i32_1 : i32, i32, i32
  }
  func.func @transform_3(%arg0: i32) -> (i32, i32) {
    %c0_i32 = arith.constant 0 : i32
    %c0_i32_0 = arith.constant 0 : i32
    %c0_i32_1 = arith.constant 0 : i32
    return %c0_i32, %c0_i32_0 : i32, i32
  }
  func.func @transform_4(%arg0: i32) -> (i32, i32) {
    %c0_i32 = arith.constant 0 : i32
    %c0_i32_0 = arith.constant 0 : i32
    return %c0_i32, %arg0 : i32, i32
  }
}

</mosaic_0001>

<bundles_post_ra>
// kernel: tpu_custom_call.1
= control target key start
LH: loop header
LB: loop body
LE: loop exit
PB: predicated region body
PF: predicated region fallthrough
CT: control target
= control target key end

     0   :  { %9 = vsyncpa [#allocation3], 0  ;;  %s1243_s0 = inlined_call_operand.vmem [shape: bf16[8,256], index: 0, kind: input, shape index: {}]   ;;  %s1244_s1 = inlined_call_operand.vmem [shape: bf16[8,768], index: 1, kind: input, shape index: {}]   ;;  %s1245_s2 = inlined_call_operand.vmem [shape: bf16[4,32,8], index: 2, kind: input, shape index: {}]   ;;  %s1246_s3 = inlined_call_operand.vmem [shape: f32[32,1], index: 3, kind: input, shape index: {}]   ;;  %s1247_s4 = inlined_call_operand.hbm [shape: bf16[32,768], index: 4, kind: output, shape index: {}]  }
   0x1   :  { %11 = vsyncpa [#allocation3 + $0x1], 0  ;;  %s1024_s15 = smov 0   ;;  %s1026_s16 = smov 0  }
   0x2   :  { %s1028_s17 = smov 0   ;;  %s1030_s18 = smov 0  }
   0x3 LB: > { %s1045_s19 = sadd.s32 4294967295, %s990_s18   ;;  %s792_s20 = sadd.s32 4294967294, %s990_s18   ;;  %s990_s18 = sphi %s1030_s18, %s1253_s18   ;;  %s986_s17 = sphi %s1028_s17, %s1252_s17   ;;  %s982_s16 = sphi %s1026_s16, %s1251_s16   ;;  %s978_s15 = sphi %s1024_s15, %s1250_s15  }
   0x4   : > { %s1049_s21 = sadd.s32 1, %s990_s18   ;;  %s118_s22 = sadd.s32 1, %s986_s17 }
   0x5   : > { %s115_s23 = ssub.s32 %s990_s18, %s1049_s21  ;;  %p128_p0 = scmp.ne.s32.totalorder %s986_s17, %s982_s16 }
   0x6   : > { %p116_p1 = scmp.eq.s32.totalorder %s115_s23, 0  ;;  %p129_p2 = scmp.eq.s32.totalorder %s1045_s19, 1 }
   0x7   : > { %p134_p3 = scmp.ne.s32.totalorder %s982_s16, %s978_s15  ;;  %p135_p4 = scmp.eq.s32.totalorder %s792_s20, 1 }
   0x8   : > { %s1060_s24 = scalar_select %p116_p1, %s986_s17, %s118_s22  }
   0x9   : > { %p1062_p5 = por %p129_p2, %p128_p0  ;;  %p1066_p6 = por %p135_p4, %p134_p3 }
   0xa   : > { %p795_p7 = scmp.ge.s32.totalorder %s990_s18, 1  ;;  %p175_p8 = scmp.lt.s32.totalorder %s990_s18, 3 }
   0xc   : > { %p176_p9 = pnand %p795_p7, %p175_p8 }
   0xd   : > { %p205_p10 = scmp.lt.s32.totalorder (!%p176_p9), %s1045_s19, 1  ;;  %s209_s27 = smul.u32 (!%p176_p9), 3, %s1045_s19 }
   0xe   : > { %179 = sbr.rel (%p176_p9) target bundleno = 390 (0x186), region = 36  ;;  %s992_s7 = smov (!%p176_p9), 1  }
   0xf   : > { %p210_p11 = scmp.lt.s32.totalorder (!%p176_p9), %s209_s27, 5  ;;  %s993_s8 = smov (!%p176_p9), 18  }
  0x10   : > { %s994_s13 = smov (!%p176_p9), 19   ;;  %s202_s30 = sand.u32 (!%p176_p9), 1, %s982_s16  }
  0x11   : > { %s878_s5 = smul.u32 (!%p176_p9), 48, %s202_s30  ;;  %s948_s23 = scalar_lea.hbm (!%p176_p9), %s1247_s4, 96 }
  0x13   : > { %s206_s28 = scalar_select %p205_p10, %s1045_s19, 1  ;;  %vm267_vm0 = vcmask 1043456   ;;  %v1085_v10 = vld [vmem:[%s1245_s2] sm:$0xff]  ;;  %vm260_vm1 = vcmask 64512   ;;  %v1092_v12 = vld [vmem:[%s1245_s2 + $0x8] sm:$0xff]  ;;  %vm256_vm2 = vcmask 7168  }
  0x14   : > { %s1255_s27 = smov (!%p210_p11, %s209_s27), 5  ;;  %v871_v24 = vld [vmem:[%s1245_s2 + $0x10] sm:$0xff]  ;;  %vm439_vm3 = vcmask 146432   ;;  %vm550_vm4 = vcmask 154624   ;;  %v872_v42 = vld [vmem:[%s1245_s2 + $0x18] sm:$0xff]  ;;  %v873_v43 = vld [vmem:[%s1245_s2 + $0x20] sm:$0xff] }
  0x15   : > { %s796_s29 = sshll.u32 %s206_s28, 2  ;;  %s797_s9 = sshll.u32 %s1255_s27, 2  ;;  %v874_v47 = vld [vmem:[%s1245_s2 + $0x28] sm:$0xff]  ;;  %v638_v48 = vld [vmem:[%s1246_s3] sm:$0xff]  ;;  %v995_v49 = vmov 0   ;;  %v875_v50 = vld [vmem:[%s1245_s2 + $0x30] sm:$0xff] }
  0x16   : > { %s208_s6 = scalar_lea.vmem %s1243_s0, %s796_s29  ;;  %s213_s12 = scalar_lea.vmem %s1244_s1, %s797_s9  ;;  %925 = vset.pattern.permute.xlu0 %v995_v49  ;;  %926 = vset.pattern.permute.xlu1 %v995_v49  ;;  %v639_v51 = vld [vmem:[%s1246_s3 + $0x8] sm:$0xff]  ;;  %v641_v52 = vld [vmem:[%s1246_s3 + $0x18] sm:$0xff]  ;;  %v640_v53 = vld [vmem:[%s1246_s3 + $0x10] sm:$0xff] }
  0x17   : > { %v217_v0 = vld [vmem:[%s208_s6] sm:$0xf]  ;;  %v219_v4 = vld [vmem:[%s213_s12 + $0x8] sm:$0xf]  ;;  %927 = vset.pattern.permute.xlu2 %v995_v49  ;;  %v876_v54 = vld [vmem:[%s1245_s2 + $0x38] sm:$0xff]  ;;  %s1191_s6 = scalar_lea.vmem [#allocation2], %s878_s5 }
  0x18   : > { %248 = vrot.lane.b32.xlu1 %v217_v0, %s992_s7  ;;  %431 = vrot.lane.b32.xlu2 %v217_v0, %s993_s8  ;;  %v218_v1 = vld [vmem:[%s213_s12] sm:$0xff]  ;;  %v224_v7 = vunpack.c.l.b16 %v219_v4  ;;  %s715_s11 = sshll.u32 %s1191_s6, 4  ;;  %s703_s12 = scalar_lea.sflag [#allocation3], %s202_s30  ;;  %s716_s11 = int_to_ptr.vmem [resolvable:$true] %s715_s11 }
  0x19   : > { %v223_v2 = vunpack.c.h.b16 %v218_v1  ;;  %v222_v3 = vunpack.c.l.b16 %v218_v1 }
  0x1a   : > { %v227_v8 = vpack.c.b16 %v224_v7, %v224_v7 }
  0x1b   : > { %v226_v5 = vpack.c.b16 %v223_v2, %v223_v2  ;;  %v225_v6 = vpack.c.b16 %v222_v3, %v222_v3 }
  0x1c   : > { %v357_v21 = vsel %vm267_vm0, %v227_v8, 0 }
  0x1d   : > { %252 = vrot.lane.b32.xlu0 %v226_v5, %s992_s7  ;;  %v351_v9 = vsel %vm267_vm0, %v225_v6, 0  ;;  %v354_v20 = vsel %vm267_vm0, %v226_v5, 0 }
  0x1e   : > { %366 = vmatpush.bf16.msra.mxu3 %v351_v9 }
  0x20   : > { %250 = vrot.lane.b32.xlu1 %v225_v6, %s992_s7  ;;  %433 = vrot.lane.b32.xlu2 %v225_v6, %s993_s8 }
  0x21   : > { %824 = vmatmul.msk.bf16.vlgmr.msra.gmra.mxu3 %vm260_vm1, %v1085_v10 }
  0x25   : > { %254 = vrot.lane.b32.xlu0 %v227_v8, %s992_s7  ;;  %s877_s7 = smul.u32 12, %s1045_s19 }
  0x27   : > { %s714_s10 = scalar_lea.hbm %s1247_s4, %s877_s7 }
  0x28   : > { %544 = vrot.lane.b32.xlu1 %v225_v6, %s994_s13  ;;  %546 = vrot.lane.b32.xlu2 %v226_v5, %s994_s13  ;;  %s717_s19 = sshll.u32 %s714_s10, 4  ;;  %s718_s19 = int_to_ptr.hbm [resolvable:$true] %s717_s19 }
  0x2d   : > { %435 = vrot.lane.b32.xlu0 %v226_v5, %s993_s8 }
  0x30   : > { %437 = vrot.lane.b32.xlu1 %v227_v8, %s993_s8  ;;  %542 = vrot.lane.b32.xlu2 %v217_v0, %s994_s13 }
  0x31   : > { %825 = vmatmul.msk.bf16.gmra.mxu3 %vm260_vm1, %v1092_v12 }
  0x35   : > { %548 = vrot.lane.b32.xlu0 %v227_v8, %s994_s13  ;;  %s942_s13 = sshra.s32 %s718_s19, 4  ;;  %s943_s13 = int_to_ptr.hbm [resolvable:$true] %s942_s13 }
  0x36   : > { %s944_s14 = scalar_lea.hbm %s943_s13, 48  ;;  %p949_p1 = scmp.lt.s32.totalorder %s943_s13, %s1247_s4 }
  0x37   : > { %p945_p12 = scmp.ne.s32.totalorder %s943_s13, %s944_s14  ;;  %p950_p2 = scmp.lt.s32.totalorder %s948_s23, %s944_s14 }
  0x38   : > { %649 = vperm.xlu1 %926, %v639_v51   ;;  %654 = vperm.xlu2 %927, %v640_v53  }
  0x39   : > { %p946_p13 = pnand %p945_p12, %p1062_p5  ;;  %p951_p3 = por %p950_p2, %p949_p1 }
  0x3b   : > { %p947_p0 = pneg %p946_p13 }
  0x3d   : > { %644 = vperm.xlu0 %925, %v638_v48   ;;  %p952_p4 = pnand %p951_p3, %p947_p0 }
  0x40   : > { %659 = vperm.xlu1 %926, %v641_v52  }
  0x72   : > { %v432_v11 = vpop.permute.xlu2 %431 }
  0x7a   : > { %v434_v13 = vpop.permute.xlu2 %433 }
  0x7b   : > { %v440_v25 = vsel %vm439_vm3, %v432_v11, %v434_v13 }
  0x7c   : > { %v450_v30 = vsel %vm267_vm0, %v440_v25, 0 }
  0x82   : > { %v547_v15 = vpop.permute.xlu2 %546 }
  0x8a   : > { %v249_v14 = vpop.permute.xlu1 %248  ;;  %v543_v26 = vpop.permute.xlu2 %542 }
  0x8f   : > { %v253_v16 = vpop.permute.xlu0 %252 }
  0x92   : > { %v251_v17 = vpop.permute.xlu1 %250 }
  0x93   : > { %v257_v18 = vsel %vm256_vm2, %v249_v14, %v251_v17  ;;  %v258_v19 = vsel %vm256_vm2, %v251_v17, %v253_v16 }
  0x94   : > { %v269_v22 = vsel %vm267_vm0, %v257_v18, 0  ;;  %v272_v23 = vsel %vm267_vm0, %v258_v19, 0 }
  0x95   : > { %284 = vmatpush.bf16.msra.mxu0 %v269_v22  ;;  %303 = vmatpush.bf16.msra.mxu1 %v272_v23 }
  0x97   : > { %v255_v27 = vpop.permute.xlu0 %254 }
  0x98   : > { %810 = vmatmul.msk.bf16.vlgmr.msra.gmra.mxu0 %vm260_vm1, %v871_v24  ;;  %812 = vmatmul.msk.bf16.vlgmr.msra.gmra.mxu1 %vm260_vm1, %v871_v24  ;;  %v259_v29 = vsel %vm256_vm2, %v253_v16, %v255_v27 }
  0x99   : > { %385 = vmatpush.bf16.msrb.mxu0 %v354_v20  ;;  %404 = vmatpush.bf16.msrb.mxu1 %v357_v21  ;;  %v275_v33 = vsel %vm267_vm0, %v259_v29, 0 }
  0x9a   : > { %v545_v28 = vpop.permute.xlu1 %544  ;;  %322 = vmatpush.bf16.msra.mxu2 %v275_v33 }
  0x9b   : > { %v552_v31 = vsel %vm550_vm4, %v545_v28, %v547_v15  ;;  %v551_v32 = vsel %vm550_vm4, %v543_v26, %v545_v28 }
  0x9c   : > { %v561_v34 = vsel %vm267_vm0, %v551_v32, 0  ;;  %v564_v35 = vsel %vm267_vm0, %v552_v31, 0 }
  0x9d   : > { %576 = vmatpush.bf16.msra.mxu1 %v561_v34  ;;  %814 = vmatmul.msk.bf16.vlgmr.msra.gmra.mxu2 %vm260_vm1, %v871_v24 }
  0x9e   : > { %465 = vmatpush.bf16.msrb.mxu2 %v450_v30 }
  0x9f   : > { %v436_v36 = vpop.permute.xlu0 %435 }
  0xa0   : > { %v441_v39 = vsel %vm439_vm3, %v434_v13, %v436_v36 }
  0xa1   : > { %v453_v41 = vsel %vm267_vm0, %v441_v39, 0 }
  0xa2   : > { %595 = vmatpush.bf16.msra.mxu2 %v564_v35  ;;  %v438_v37 = vpop.permute.xlu1 %437  ;;  %484 = vmatpush.bf16.msrb.mxu3 %v453_v41 }
  0xa3   : > { %v442_v38 = vsel %vm439_vm3, %v436_v36, %v438_v37 }
  0xa4   : > { %v456_v40 = vsel %vm267_vm0, %v442_v38, 0  ;;  %v368_v55 = vpop.f32.mrf.mxu3 }
  0xa5   : > { %503 = vmatpush.bf16.msra.mxu0 %v456_v40  ;;  %844 = vmatmul.msk.bf16.vlgmr.msrb.gmra.mxu3 %vm260_vm1, %v873_v43 }
  0xa7   : > { %v549_v44 = vpop.permute.xlu0 %548 }
  0xa8   : > { %811 = vmatmul.msk.bf16.gmra.mxu0 %vm260_vm1, %v872_v42  ;;  %813 = vmatmul.msk.bf16.gmra.mxu1 %vm260_vm1, %v872_v42  ;;  %v553_v45 = vsel %vm550_vm4, %v547_v15, %v549_v44 }
  0xa9   : > { %v567_v46 = vsel %vm267_vm0, %v553_v45, 0 }
  0xaa   : > { %614 = vmatpush.bf16.msra.mxu3 %v567_v46  ;;  %v650_v46 = vpop.permute.xlu1 %649 }
  0xac   : > { %v370_v56 = vpop.f32.mrf.mxu3 }
  0xad   : > { %815 = vmatmul.msk.bf16.gmra.mxu2 %vm260_vm1, %v872_v42 }
  0xaf   : > { %v645_v32 = vpop.permute.xlu0 %644 }
  0xb4   : > { %v373_v60 = vpop.f32.mrf.mxu3 }
  0xb5   : > { %845 = vmatmul.msk.bf16.gmra.mxu3 %vm260_vm1, %v874_v47 }
  0xb8   : > { %826 = vmatmul.msk.bf16.vlgmr.msrb.gmra.mxu0 %vm260_vm1, %v1085_v10  ;;  %828 = vmatmul.msk.bf16.vlgmr.msrb.gmra.mxu1 %vm260_vm1, %v1085_v10 }
  0xbc   : > { %v375_v0 = vpop.f32.mrf.mxu3 }
  0xbd   : > { %842 = vmatmul.msk.bf16.vlgmr.msrb.gmra.mxu2 %vm260_vm1, %v873_v43 }
  0xc5   : > { %864 = vmatmul.msk.bf16.vlgmr.msra.gmra.mxu3 %vm260_vm1, %v875_v50 }
  0xc8   : > { %827 = vmatmul.msk.bf16.gmra.mxu0 %vm260_vm1, %v1092_v12  ;;  %829 = vmatmul.msk.bf16.gmra.mxu1 %vm260_vm1, %v1092_v12 }
  0xcd   : > { %843 = vmatmul.msk.bf16.gmra.mxu2 %vm260_vm1, %v874_v47 }
  0xd5   : > { %865 = vmatmul.msk.bf16.gmra.mxu3 %vm260_vm1, %v876_v54 }
  0xd8   : > { %846 = vmatmul.msk.bf16.vlgmr.msra.gmra.mxu0 %vm260_vm1, %v873_v43  ;;  %860 = vmatmul.msk.bf16.vlgmr.msra.gmra.mxu1 %vm260_vm1, %v875_v50 }
  0xdd   : > { %862 = vmatmul.msk.bf16.vlgmr.msra.gmra.mxu2 %vm260_vm1, %v875_v50 }
  0xe8   : > { %847 = vmatmul.msk.bf16.gmra.mxu0 %vm260_vm1, %v874_v47  ;;  %861 = vmatmul.msk.bf16.gmra.mxu1 %vm260_vm1, %v876_v54 }
  0xed   : > { %863 = vmatmul.msk.bf16.gmra.mxu2 %vm260_vm1, %v876_v54 }
 0x115   : > { %v286_v57 = vpop.f32.mrf.mxu0  ;;  %v305_v58 = vpop.f32.mrf.mxu1 }
 0x116   : > { %v369_v59 = vadd.f32 %v368_v55, %v286_v57 }
 0x11d   : > { %v288_v61 = vpop.f32.mrf.mxu0  ;;  %v307_v62 = vpop.f32.mrf.mxu1 }
 0x11e   : > { %v371_v63 = vadd.f32 %v370_v56, %v288_v61 }
 0x120   : > { %v324_v1 = vpop.f32.mrf.mxu2 }
 0x125   : > { %v291_v2 = vpop.f32.mrf.mxu0  ;;  %v1172_v3 = vpop.f32.mrf.mxu1 }
 0x126   : > { %v1174_v4 = vadd.f32 %v373_v60, %v291_v2 }
 0x128   : > { %v326_v5 = vpop.f32.mrf.mxu2  ;;  %v486_v6 = vpop.f32.mrf.mxu3 }
 0x12d   : > { %v293_v7 = vpop.f32.mrf.mxu0  ;;  %v1176_v8 = vpop.f32.mrf.mxu1 }
 0x12e   : > { %v1178_v9 = vadd.f32 %v375_v0, %v293_v7 }
 0x130   : > { %v329_v10 = vpop.f32.mrf.mxu2  ;;  %v488_v11 = vpop.f32.mrf.mxu3 }
 0x135   : > { %v387_v12 = vpop.f32.mrf.mxu0  ;;  %v406_v13 = vpop.f32.mrf.mxu1 }
 0x136   : > { %v407_v27 = vadd.f32 %v406_v13, %v324_v1  ;;  %v388_v39 = vadd.f32 %v387_v12, %v305_v58 }
 0x138   : > { %v331_v14 = vpop.f32.mrf.mxu2  ;;  %v1180_v15 = vpop.f32.mrf.mxu3  ;;  %v516_v47 = vadd.f32 %v486_v6, %v388_v39 }
 0x13d   : > { %v389_v16 = vpop.f32.mrf.mxu0  ;;  %v408_v17 = vpop.f32.mrf.mxu1 }
 0x13e   : > { %v409_v36 = vadd.f32 %v408_v17, %v326_v5  ;;  %v390_v55 = vadd.f32 %v389_v16, %v307_v62  ;;  %v655_v5 = vpop.permute.xlu2 %654 }
 0x140   : > { %v467_v18 = vpop.f32.mrf.mxu2  ;;  %v1182_v19 = vpop.f32.mrf.mxu3  ;;  %v519_v6 = vadd.f32 %v488_v11, %v390_v55 }
 0x141   : > { %v515_v40 = vadd.f32 %v467_v18, %v369_v59 }
 0x145   : > { %v392_v20 = vpop.f32.mrf.mxu0  ;;  %v411_v21 = vpop.f32.mrf.mxu1 }
 0x146   : > { %v412_v51 = vadd.f32 %v411_v21, %v329_v10  ;;  %v393_v18 = vadd.f32 %v392_v20, %v1172_v3 }
 0x148   : > { %v469_v22 = vpop.f32.mrf.mxu2  ;;  %v616_v25 = vpop.f32.mrf.mxu3 }
 0x149   : > { %v518_v57 = vadd.f32 %v469_v22, %v371_v63 }
 0x14d   : > { %v1184_v23 = vpop.f32.mrf.mxu0  ;;  %v413_v24 = vpop.f32.mrf.mxu1 }
 0x14e   : > { %v414_v17 = vadd.f32 %v413_v24, %v331_v14  ;;  %v660_v24 = vpop.permute.xlu1 %659 }
 0x150   : > { %v472_v26 = vpop.f32.mrf.mxu2  ;;  %v618_v33 = vpop.f32.mrf.mxu3 }
 0x155   : > { %v505_v28 = vpop.f32.mrf.mxu0  ;;  %v578_v30 = vpop.f32.mrf.mxu1 }
 0x156   : > { %v517_v29 = vadd.f32 %v505_v28, %v407_v27  ;;  %v626_v43 = vadd.f32 %v578_v30, %v515_v40 }
 0x158   : > { %v628_v31 = vadd.f32 %v616_v25, %v517_v29  ;;  %v1189_v35 = vpop.f32.mrf.mxu2  ;;  %v621_v50 = vpop.f32.mrf.mxu3  ;;  %v662_v52 = vadd.f32 %v645_v32, %v626_v43  ;;  %v521_v25 = vadd.f32 %v472_v26, %v1174_v4 }
 0x15a   : > { %v664_v34 = vadd.f32 %v645_v32, %v628_v31  ;;  %v674_v61 = vmax.f32 %v662_v52, 0.0 }
 0x15c   : > { %v676_v37 = vmax.f32 %v664_v34, 0.0 }
 0x15d   : > { %v507_v38 = vpop.f32.mrf.mxu0  ;;  %v580_v45 = vpop.f32.mrf.mxu1 }
 0x15e   : > { %v687_v41 = vpack.c.bf16 %v676_v37, %v676_v37  ;;  %v520_v42 = vadd.f32 %v507_v38, %v409_v36  ;;  %v629_v0 = vadd.f32 %v580_v45, %v518_v57  ;;  %v395_v37 = vadd.f32 %v1184_v23, %v1176_v8 }
 0x15f   : > { %v524_v38 = vadd.f32 %v1189_v35, %v1178_v9 }
 0x160   : > { %695 = vst [vmem:[%s1191_s6 + $0x8] sm:$0xf] %v687_v41  ;;  %v631_v44 = vadd.f32 %v618_v33, %v520_v42  ;;  %v597_v49 = vpop.f32.mrf.mxu2  ;;  %v665_v62 = vadd.f32 %v650_v46, %v629_v0  ;;  %v623_v22 = vpop.f32.mrf.mxu3  ;;  %v525_v43 = vadd.f32 %v1182_v19, %v395_v37 }
 0x161   : > { %v627_v54 = vadd.f32 %v597_v49, %v516_v47 }
 0x162   : > { %v667_v48 = vadd.f32 %v650_v46, %v631_v44  ;;  %v677_v29 = vmax.f32 %v665_v62, 0.0 }
 0x163   : > { %v663_v59 = vadd.f32 %v645_v32, %v627_v54  ;;  %v522_v32 = vadd.f32 %v1180_v15, %v393_v18 }
 0x164   : > { %v679_v53 = vmax.f32 %v667_v48, 0.0 }
 0x165   : > { %v510_v56 = vpop.f32.mrf.mxu0  ;;  %v675_v1 = vmax.f32 %v663_v59, 0.0  ;;  %v583_v10 = vpop.f32.mrf.mxu1 }
 0x166   : > { %v689_v58 = vpack.c.bf16 %v679_v53, %v679_v53  ;;  %v523_v60 = vadd.f32 %v510_v56, %v412_v51  ;;  %v632_v30 = vadd.f32 %v583_v10, %v521_v25 }
 0x167   : > { %v686_v7 = vpack.c.bf16 %v675_v1, %v674_v61 }
 0x168   : > { %697 = vst [vmem:[%s1191_s6 + $0x14] sm:$0xf] %v689_v58  ;;  %v634_v2 = vadd.f32 %v621_v50, %v523_v60  ;;  %v599_v13 = vpop.f32.mrf.mxu2  ;;  %v668_v34 = vadd.f32 %v655_v5, %v632_v30 }
 0x169   : > { %694 = vst [vmem:[%s1191_s6] sm:$0xff] %v686_v7  ;;  %v630_v16 = vadd.f32 %v599_v13, %v519_v6 }
 0x16a   : > { %v670_v12 = vadd.f32 %v655_v5, %v634_v2  ;;  %v680_v15 = vmax.f32 %v668_v34, 0.0 }
 0x16b   : > { %v666_v28 = vadd.f32 %v650_v46, %v630_v16 }
 0x16c   : > { %v682_v63 = vmax.f32 %v670_v12, 0.0 }
 0x16d   : > { %v512_v21 = vpop.f32.mrf.mxu0  ;;  %v678_v31 = vmax.f32 %v666_v28, 0.0  ;;  %v585_v26 = vpop.f32.mrf.mxu1 }
 0x16e   : > { %v691_v27 = vpack.c.bf16 %v682_v63, %v682_v63  ;;  %v526_v11 = vadd.f32 %v512_v21, %v414_v17  ;;  %v635_v41 = vadd.f32 %v585_v26, %v524_v38 }
 0x16f   : > { %v688_v33 = vpack.c.bf16 %v678_v31, %v677_v29 }
 0x170   : > { %699 = vst [vmem:[%s1191_s6 + $0x20] sm:$0xf] %v691_v27  ;;  %v637_v14 = vadd.f32 %v623_v22, %v526_v11  ;;  %v602_v20 = vpop.f32.mrf.mxu2  ;;  %v671_v8 = vadd.f32 %v660_v24, %v635_v41 }
 0x171   : > { %696 = vst [vmem:[%s1191_s6 + $0xc] sm:$0xff] %v688_v33  ;;  %v633_v4 = vadd.f32 %v602_v20, %v522_v32 }
 0x172   : > { %v673_v3 = vadd.f32 %v660_v24, %v637_v14  ;;  %v683_v35 = vmax.f32 %v671_v8, 0.0 }
 0x173   : > { %v669_v40 = vadd.f32 %v655_v5, %v633_v4 }
 0x174   : > { %v685_v36 = vmax.f32 %v673_v3, 0.0 }
 0x175   : > { %v681_v42 = vmax.f32 %v669_v40, 0.0 }
 0x176   : > { %v693_v39 = vpack.c.bf16 %v685_v36, %v685_v36 }
 0x177   : > { %v690_v44 = vpack.c.bf16 %v681_v42, %v680_v15 }
 0x178   : > { %701 = vst [vmem:[%s1191_s6 + $0x2c] sm:$0xf] %v693_v39  ;;  %v604_v45 = vpop.f32.mrf.mxu2 }
 0x179   : > { %698 = vst [vmem:[%s1191_s6 + $0x18] sm:$0xff] %v690_v44  ;;  %v636_v9 = vadd.f32 %v604_v45, %v525_v43 }
 0x17b   : > { %v672_v23 = vadd.f32 %v660_v24, %v636_v9 }
 0x17d   : > { %v684_v46 = vmax.f32 %v672_v23, 0.0 }
 0x17f   : > { %v692_v47 = vpack.c.bf16 %v684_v46, %v683_v35 }
 0x181   : > { %700 = vst [vmem:[%s1191_s6 + $0x24] sm:$0xff] %v692_v47 }
 0x182   : > { %955 = shalt.err (!%p952_p4)
}
 0x183   : > { %s996_s29 = smov 192   ;;  %s997_s30 = smov 384  }
 0x184   : > { %s998_s5 = smov 12  }
 0x185   : > { %879 = dma.vmem_to_hbm [thread:$0]  (%p1062_p5), %s716_s11, 768, %s718_s19, %s703_s12, %s996_s29, %s997_s30, %s998_s5  }
 0x186 PF: > { %p885_p7 = scmp.ge.s32.totalorder %s990_s18, 2  ;;  %s732_s6 = sand.u32 1, %s978_s15  }
 0x187   : > { %s733_s7 = scalar_lea.sflag [#allocation3], %s732_s6 }
 0x188   : > { %p882_p8 = pnand %p885_p7, %p1066_p6 }
 0x18a   : > { %p883_p9 = pneg %p882_p8 }
 0x18c   : > { %973 = dma.done.wait (%p883_p9), %s733_s7, 768  }
 0x18d   : > { %975 = vsyncadd (%p883_p9), %s733_s7, 4294966528  ;;  %p14_p10 = scmp.ge.s32.totalorder %s1049_s21, 4   ;;  %s1250_s15 = smov %s982_s16 }
 0x18e   : > { %s1251_s16 = smov %s986_s17  ;;  %s1252_s17 = smov %s1060_s24 }
 0x18f   : > { %s1253_s18 = smov %s1049_s21  ;;  %16 = sbr.rel (!%p14_p10) target bundleno = 3 (0x3), region = 77 }
 0x194   :  { %739 = vsyncpa [#allocation3], 1 }
 0x195   :  { %741 = vsyncpa [#allocation3 + $0x1], 1 }

</bundles_post_ra>
